<compile_context>
chip_gen: v7x
topology: tpu7x:2x2x1
jax: 0.10.0
libtpu: 0.0.40
codegen_flags: <defaults>
</compile_context>

<pallas_src>
from functools import partial

import jax
import jax.numpy as jnp
from jax.experimental import pallas as pl
from jax.experimental.pallas import tpu as pltpu


def _channel_exchange_kernel(x1_ref, x2_ref, o1_ref, o2_ref, *, p_int, c_block):
    """One (1, c_block, hw_block) tile: swap channels where (channel % p_int)==0."""
    cj = pl.program_id(1)  # channel-block index
    # Global channel index as a (1, c_block, 1) column; broadcast over lanes
    # happens inside the select (cheaper than a full-tile iota + mod).
    ch = cj * c_block + jax.lax.broadcasted_iota(jnp.int32, (1, c_block, 1), 1)
    swap = (ch % p_int) == 0

    a = x1_ref[...]
    b = x2_ref[...]
    o1_ref[...] = jnp.where(swap, b, a)
    o2_ref[...] = jnp.where(swap, a, b)


def _largest_aligned_divisor(total, cap, align):
    """Largest divisor of `total` that is <= cap and a multiple of `align`.

    Assumes total % align == 0.  Falls back to `total` (full extent is always
    a legal block dim)."""
    if total <= cap:
        return total
    b = (cap // align) * align
    while b >= align:
        if total % b == 0:
            return b
        b -= align
    return total


def channel_exchange_pallas(x1, x2, p=1 / 2):
    """x1, x2: (N, C, H, W).  Returns (out1, out2) with the same shape/dtype."""
    assert x1.shape == x2.shape and x1.dtype == x2.dtype
    assert 0 < p <= 1
    p_int = int(round(1.0 / p))  # mirrors self.p = int(1/p)

    N, C, H, W = x1.shape
    HW = H * W
    itemsize = jnp.dtype(x1.dtype).itemsize

    # Free (layout-preserving) reshape: fold H*W into the lane axis.
    x1f = x1.reshape(N, C, HW)
    x2f = x2.reshape(N, C, HW)

    # --- Tile selection -------------------------------------------------
    # Last block dim: multiple of 128 (or full extent), capped at 2048 lanes.
    if HW % 128 == 0:
        hw_block = _largest_aligned_divisor(HW, 2048, 128)
    else:
        hw_block = HW  # full extent is always legal

    # Second-to-last block dim: multiple of 8 (or full extent).  Budget the
    # per-array tile at ~1 MiB so the double-buffered working set
    # (4 arrays x 2 buffers) stays around 8 MiB.
    budget_bytes = 1 << 20
    c_cap = max(8, (budget_bytes // max(1, hw_block * itemsize)) // 8 * 8)
    if C % 8 == 0:
        c_block = _largest_aligned_divisor(C, min(c_cap, 512), 8)
    else:
        c_block = C  # full extent is always legal

    grid = (N, C // c_block, HW // hw_block)
    block = (1, c_block, hw_block)
    idx = lambda n, cj, hj: (n, cj, hj)

    kernel = partial(_channel_exchange_kernel, p_int=p_int, c_block=c_block)

    out1, out2 = pl.pallas_call(
        kernel,
        out_shape=(
            jax.ShapeDtypeStruct((N, C, HW), x1.dtype),
            jax.ShapeDtypeStruct((N, C, HW), x2.dtype),
        ),
        grid=grid,
        in_specs=[
            pl.BlockSpec(block, idx),
            pl.BlockSpec(block, idx),
        ],
        out_specs=(
            pl.BlockSpec(block, idx),
            pl.BlockSpec(block, idx),
        ),
        compiler_params=pltpu.CompilerParams(
            # Pure elementwise op: every grid axis is independent -> parallel
            # (lets v7x shard the grid across its two TensorCores).
            dimension_semantics=("parallel", "parallel", "parallel"),
        ),
    )(x1f, x2f)

    return out1.reshape(N, C, H, W), out2.reshape(N, C, H, W)


def _reference(x1, x2, p_int):
    """Pure-JAX reference mirroring the PyTorch forward."""
    N, C, H, W = x1.shape
    swap = ((jnp.arange(C) % p_int) == 0)[None, :, None, None]
    out1 = jnp.where(swap, x2, x1)
    out2 = jnp.where(swap, x1, x2)
    return out1, out2


if __name__ == "__main__":
    # Small shapes consistent with the module: N=2, C=4, spatial 16x16.
    N, C, H, W = 2, 4, 16, 16
    key = jax.random.PRNGKey(0)
    k1, k2 = jax.random.split(key)
    x1 = jax.random.normal(k1, (N, C, H, W), jnp.float32)
    x2 = jax.random.normal(k2, (N, C, H, W), jnp.float32)

    out1, out2 = channel_exchange_pallas(x1, x2, p=1 / 2)
    out1, out2 = jax.block_until_ready((out1, out2))

    ref1, ref2 = _reference(x1, x2, 2)
    assert out1.shape == x1.shape and out2.shape == x2.shape
    # Pure data movement: results must match exactly.
    assert jnp.array_equal(out1, ref1), float(jnp.max(jnp.abs(out1 - ref1)))
    assert jnp.array_equal(out2, ref2), float(jnp.max(jnp.abs(out2 - ref2)))

    print("KERNEL_OK")
</pallas_src>

<mosaic_0001>
module attributes {stable_mosaic.version = 11 : i64} {
  func.func @_channel_exchange_kernel(%arg0: i32, %arg1: i32, %arg2: i32, %arg3: memref<1x4x256xf32, #tpu.memory_space<vmem>>, %arg4: memref<1x4x256xf32, #tpu.memory_space<vmem>>, %arg5: memref<1x4x256xf32, #tpu.memory_space<vmem>>, %arg6: memref<1x4x256xf32, #tpu.memory_space<vmem>>) attributes {dimension_semantics = [#tpu.dimension_semantics<parallel>, #tpu.dimension_semantics<parallel>, #tpu.dimension_semantics<parallel>], iteration_bounds = array<i64: 2, 1, 1>, scalar_prefetch = 0 : i64, scratch_operands = 0 : i64, tpu.core_type = #tpu.core_type<tc>, window_params = [{transform_indices = @transform_0, window_bounds = array<i64: 1, 4, 256>}, {transform_indices = @transform_1, window_bounds = array<i64: 1, 4, 256>}, {transform_indices = @transform_2, window_bounds = array<i64: 1, 4, 256>}, {transform_indices = @transform_3, window_bounds = array<i64: 1, 4, 256>}]} {
    %c4_i32 = arith.constant 4 : i32
    %0 = arith.muli %arg1, %c4_i32 : i32
    %1 = tpu.iota {dimensions = array<i32: 1>} : vector<1x4x1xi32>
    %2 = vector.broadcast %0 : i32 to vector<1x4x1xi32>
    %3 = arith.addi %2, %1 : vector<1x4x1xi32>
    %c2_i32 = arith.constant 2 : i32
    %c0_i32 = arith.constant 0 : i32
    %4 = arith.cmpi eq, %c2_i32, %c0_i32 : i32
    %c1_i32 = arith.constant 1 : i32
    %5 = arith.select %4, %c1_i32, %c2_i32 : i32
    %6 = vector.broadcast %5 : i32 to vector<1x4x1xi32>
    %7 = arith.remsi %3, %6 : vector<1x4x1xi32>
    %c0_i32_0 = arith.constant 0 : i32
    %8 = vector.broadcast %c0_i32_0 : i32 to vector<1x4x1xi32>
    %9 = arith.cmpi ne, %7, %8 : vector<1x4x1xi32>
    %c0_i32_1 = arith.constant 0 : i32
    %10 = vector.broadcast %c0_i32_1 : i32 to vector<1x4x1xi32>
    %11 = arith.cmpi slt, %7, %10 : vector<1x4x1xi32>
    %c0_i32_2 = arith.constant 0 : i32
    %12 = arith.cmpi slt, %5, %c0_i32_2 : i32
    %13 = vector.broadcast %12 : i1 to vector<1x4x1xi1>
    %14 = vector.broadcast %13 : vector<1x4x1xi1> to vector<1x4x1xi1>
    %15 = arith.xori %11, %14 : vector<1x4x1xi1>
    %16 = arith.andi %15, %9 : vector<1x4x1xi1>
    %17 = vector.broadcast %5 : i32 to vector<1x4x1xi32>
    %18 = arith.addi %7, %17 : vector<1x4x1xi32>
    %19 = arith.select %16, %18, %7 : vector<1x4x1xi1>, vector<1x4x1xi32>
    %c0_i32_3 = arith.constant 0 : i32
    %20 = vector.broadcast %c0_i32_3 : i32 to vector<1x4x1xi32>
    %21 = arith.cmpi eq, %19, %20 : vector<1x4x1xi32>
    %c0 = arith.constant 0 : index
    %c0_4 = arith.constant 0 : index
    %c0_5 = arith.constant 0 : index
    %22 = vector.load %arg3[%c0, %c0_4, %c0_5] : memref<1x4x256xf32, #tpu.memory_space<vmem>>, vector<1x4x256xf32>
    %c0_6 = arith.constant 0 : index
    %c0_7 = arith.constant 0 : index
    %c0_8 = arith.constant 0 : index
    %23 = vector.load %arg4[%c0_6, %c0_7, %c0_8] : memref<1x4x256xf32, #tpu.memory_space<vmem>>, vector<1x4x256xf32>
    %24 = vector.shape_cast %21 : vector<1x4x1xi1> to vector<1x4x1xi1>
    %25 = vector.broadcast %24 : vector<1x4x1xi1> to vector<1x4x256xi1>
    %26 = arith.select %25, %23, %22 : vector<1x4x256xi1>, vector<1x4x256xf32>
    %c0_9 = arith.constant 0 : index
    %c0_10 = arith.constant 0 : index
    %c0_11 = arith.constant 0 : index
    %27 = vector.load %arg5[%c0_9, %c0_10, %c0_11] : memref<1x4x256xf32, #tpu.memory_space<vmem>>, vector<1x4x256xf32>
    tpu.vector_store %arg5[%c0_9, %c0_10, %c0_11], %26 {strides = array<i32>} : memref<1x4x256xf32, #tpu.memory_space<vmem>>, vector<1x4x256xf32>,
    %28 = vector.shape_cast %21 : vector<1x4x1xi1> to vector<1x4x1xi1>
    %29 = vector.broadcast %28 : vector<1x4x1xi1> to vector<1x4x256xi1>
    %30 = arith.select %29, %22, %23 : vector<1x4x256xi1>, vector<1x4x256xf32>
    %c0_12 = arith.constant 0 : index
    %c0_13 = arith.constant 0 : index
    %c0_14 = arith.constant 0 : index
    %31 = vector.load %arg6[%c0_12, %c0_13, %c0_14] : memref<1x4x256xf32, #tpu.memory_space<vmem>>, vector<1x4x256xf32>
    tpu.vector_store %arg6[%c0_12, %c0_13, %c0_14], %30 {strides = array<i32>} : memref<1x4x256xf32, #tpu.memory_space<vmem>>, vector<1x4x256xf32>,
    return
  }
  func.func @transform_0(%arg0: i32, %arg1: i32, %arg2: i32) -> (i32, i32, i32) {
    %c0_i32 = arith.constant 0 : i32
    return %arg0, %arg1, %arg2 : i32, i32, i32
  }
  func.func @transform_1(%arg0: i32, %arg1: i32, %arg2: i32) -> (i32, i32, i32) {
    %c0_i32 = arith.constant 0 : i32
    return %arg0, %arg1, %arg2 : i32, i32, i32
  }
  func.func @transform_2(%arg0: i32, %arg1: i32, %arg2: i32) -> (i32, i32, i32) {
    %c0_i32 = arith.constant 0 : i32
    return %arg0, %arg1, %arg2 : i32, i32, i32
  }
  func.func @transform_3(%arg0: i32, %arg1: i32, %arg2: i32) -> (i32, i32, i32) {
    %c0_i32 = arith.constant 0 : i32
    return %arg0, %arg1, %arg2 : i32, i32, i32
  }
}

</mosaic_0001>

<bundles_post_ra>
// kernel: tpu_custom_call.1
= control target key start
LH: loop header
LB: loop body
LE: loop exit
PB: predicated region body
PF: predicated region fallthrough
CT: control target
= control target key end

     0   :  { %9 = vsyncpa [#allocation3], 0  ;;  %s1095_s0 = inlined_call_operand.hbm [shape: f32[2,4,256], index: 0, kind: input, shape index: {}]   ;;  %s1096_s1 = inlined_call_operand.hbm [shape: f32[2,4,256], index: 1, kind: input, shape index: {}]   ;;  %s1097_s2 = inlined_call_operand.hbm [shape: f32[2,4,256], index: 2, kind: output, shape index: {0}]   ;;  %s1098_s3 = inlined_call_operand.hbm [shape: f32[2,4,256], index: 3, kind: output, shape index: {1}]  }
   0x1   :  { %11 = vsyncpa [#allocation3 + $0x1], 0 }
   0x2   :  { %12 = vsyncpa [#allocation6], 0 }
   0x3   :  { %14 = vsyncpa [#allocation6 + $0x1], 0 }
   0x4   :  { %15 = vsyncpa [#allocation4], 0 }
   0x5   :  { %17 = vsyncpa [#allocation4 + $0x1], 0 }
   0x6   :  { %18 = vsyncpa [#allocation9], 0 }
   0x7   :  { %20 = vsyncpa [#allocation9 + $0x1], 0  ;;  %s828_s12 = smov 0   ;;  %s830_s13 = smov 0  }
   0x8   :  { %s832_s14 = smov 0   ;;  %s834_s15 = smov 0  }
   0x9   :  { %s836_s16 = smov 0   ;;  %s838_s17 = smov 0  }
   0xa LB: > { %s523_s18 = sadd.s32 4294967295, %s802_s17   ;;  %s524_s19 = sadd.s32 4294967294, %s802_s17   ;;  %s802_s17 = sphi %s838_s17, %s26_s17   ;;  %s798_s16 = sphi %s836_s16, %s1120_s16   ;;  %s794_s15 = sphi %s834_s15, %s1119_s15   ;;  %s790_s14 = sphi %s832_s14, %s1118_s14   ;;  %s786_s13 = sphi %s830_s13, %s1117_s13   ;;  %s782_s12 = sphi %s828_s12, %s1116_s12  }
   0xb   : > { %s45_s20 = sadd.s32 1, %s798_s16  ;;  %s56_s21 = sadd.s32 1, %s790_s14 }
   0xc   : > { %p47_p0 = scmp.ge.s32.totalorder %s45_s20, 2  ;;  %p63_p1 = scmp.ne.s32.totalorder %s790_s14, %s786_s13 }
   0xd   : > { %p64_p2 = scmp.eq.s32.totalorder %s802_s17, 0  ;;  %p69_p3 = scmp.ne.s32.totalorder %s786_s13, %s782_s12 }
   0xe   : > { %s1122_s20 = smov (%p47_p0, %s45_s20), 0  ;;  %p70_p5 = scmp.eq.s32.totalorder %s523_s18, 0 }
   0xf   : > { %p869_p4 = por %p64_p2, %p63_p1  ;;  %s49_s23 = ssub.s32 %s798_s16, %s1122_s20 }
  0x10   : > { %p127_p6 = scmp.eq.s32.totalorder %s523_s18, 1  ;;  %p54_p7 = scmp.eq.s32.totalorder %s49_s23, 0 }
  0x11   : > { %p875_p8 = por %p70_p5, %p69_p3  ;;  %p133_p10 = scmp.eq.s32.totalorder %s524_s19, 1 }
  0x12   : > { %p879_p9 = por %p127_p6, %p63_p1  ;;  %p572_p13 = scmp.lt.s32.totalorder %s802_s17, 2 }
  0x13   : > { %s1102_s24 = scalar_select %p875_p8, 1, 0 }
  0x14   : > { %s1103_s25 = scalar_select %p879_p9, 1, 0 }
  0x15   : > { %s884_s26 = scalar_select %p54_p7, %s790_s14, %s56_s21  }
  0x16   : > { %p886_p11 = por %p133_p10, %p69_p3  ;;  %s893_s28 = sand.u32 1, %s790_s14  }
  0x17   : > { %s527_s29 = sshll.u32 %s893_s28, 3  ;;  %s546_s30 = sshll.u32 %s798_s16, 7 }
  0x18   : > { %s1104_s27 = scalar_select %p886_p11, 1, 0 }
  0x19   : > { %s902_s6 = scalar_lea.hbm %s1095_s0, %s546_s30  ;;  %s187_s7 = scalar_lea.vmem [#allocation2], %s527_s29 }
  0x1a   : > { %s199_s8 = sshll.u32 %s187_s7, 4  ;;  %p910_p0 = pnand %p572_p13, %p869_p4  ;;  %s906_s8 = int_to_ptr.vmem [resolvable:$true] %s199_s8 }
  0x1b   : > { %s184_s10 = scalar_lea.sflag [#allocation3], %s893_s28  ;;  %s624_s11 = scalar_lea.hbm %s902_s6, 128 }
  0x1c   : > { %p625_p3 = scmp.ne.s32.totalorder %s902_s6, %s624_s11  ;;  %p626_p5 = pneg %p910_p0 }
  0x1d   : > { %s629_s21 = scalar_lea.hbm %s1095_s0, 256  ;;  %p630_p4 = scmp.lt.u32.totalorder %s902_s6, %s1095_s0 }
  0x1e   : > { %p627_p6 = pnand %p626_p5, %p625_p3  ;;  %p631_p10 = scmp.lt.u32.totalorder %s629_s21, %s624_s11 }
  0x1f   : > { %p633_p12 = scmp.lt.u32.totalorder %s624_s11, %s902_s6 }
  0x20   : > { %p628_p7 = pneg %p627_p6  ;;  %p632_p13 = por %p631_p10, %p630_p4 }
  0x22   : > { %p634_p1 = por %p633_p12, %p632_p13 }
  0x24   : > { %p635_p2 = pnand %p634_p1, %p628_p7 }
  0x26   : > { %638 = shalt.err (!%p635_p2)
}
  0x27   : > { %s639_s4 = scalar_lea.vmem %s906_s8, 128  ;;  %s804_s5 = smov [#allocation2]  }
  0x28   : > { %p640_p3 = scmp.ne.s32.totalorder %s906_s8, %s639_s4  ;;  %s644_s7 = sshll.u32 %s804_s5, 4  ;;  %s645_s7 = int_to_ptr.vmem [resolvable:$false] %s644_s7 }
  0x29   : > { %s646_s18 = scalar_lea.vmem %s645_s7, 256  ;;  %p647_p9 = scmp.lt.s32.totalorder %s906_s8, %s645_s7 }
  0x2a   : > { %p642_p6 = pnand %p640_p3, %p626_p5  ;;  %p648_p4 = scmp.lt.s32.totalorder %s646_s18, %s639_s4 }
  0x2c   : > { %p643_p11 = pneg %p642_p6  ;;  %p649_p10 = por %p648_p4, %p647_p9 }
  0x2e   : > { %p650_p12 = pnand %p649_p10, %p643_p11 }
  0x30   : > { %653 = shalt.err (!%p650_p12)
}
  0x31   : > { %561 = dma.hbm_to_vmem [thread:$0]  (!%p910_p0), %s902_s6, 128, %s906_s8, %s184_s10  }
  0x32   : > { %p1106_p1 = scmp.lt.s32.totalorder %s802_s17, 3  ;;  %p1107_p2 = scmp.ge.s32.totalorder %s802_s17, 1 }
  0x33   : > { %s955_s22 = scalar_lea.hbm %s1096_s1, %s546_s30  ;;  %s210_s23 = scalar_lea.vmem [#allocation5], %s527_s29 }
  0x34   : > { %p946_p7 = pnand %p1107_p2, %p1106_p1  ;;  %s222_s4 = sshll.u32 %s210_s23, 4  ;;  %s223_s4 = int_to_ptr.vmem [resolvable:$true] %s222_s4 }
  0x35   : > { %s207_s6 = scalar_lea.sflag [#allocation6], %s893_s28  ;;  %s654_s8 = scalar_lea.hbm %s955_s22, 128 }
  0x36   : > { %s1108_s11 = scalar_select %p946_p7, 1, 0 }
  0x37   : > { %p655_p9 = scmp.ne.s32.totalorder %s955_s22, %s654_s8  ;;  %s659_s30 = scalar_lea.hbm %s1096_s1, 256 }
  0x38   : > { %p660_p3 = scmp.lt.u32.totalorder %s955_s22, %s1096_s1  ;;  %p661_p6 = scmp.lt.u32.totalorder %s659_s30, %s654_s8 }
  0x39   : > { %p657_p11 = pnand %p655_p9, %p626_p5  ;;  %p663_p10 = scmp.lt.u32.totalorder %s654_s8, %s955_s22 }
  0x3a   : > { %p662_p4 = por %p661_p6, %p660_p3 }
  0x3b   : > { %p658_p13 = pneg %p657_p11 }
  0x3c   : > { %p664_p12 = por %p663_p10, %p662_p4 }
  0x3e   : > { %p665_p1 = pnand %p664_p12, %p658_p13 }
  0x40   : > { %668 = shalt.err (!%p665_p1)
}
  0x41   : > { %s669_s28 = scalar_lea.vmem %s223_s4, 128  ;;  %s805_s29 = smov [#allocation5]  }
  0x42   : > { %p670_p2 = scmp.ne.s32.totalorder %s223_s4, %s669_s28  ;;  %s674_s19 = sshll.u32 %s805_s29, 4  ;;  %s675_s19 = int_to_ptr.vmem [resolvable:$false] %s674_s19 }
  0x43   : > { %s676_s21 = scalar_lea.vmem %s675_s19, 256  ;;  %p677_p8 = scmp.lt.s32.totalorder %s223_s4, %s675_s19 }
  0x44   : > { %p672_p9 = pnand %p670_p2, %p626_p5  ;;  %p678_p7 = scmp.lt.s32.totalorder %s676_s21, %s669_s28 }
  0x46   : > { %p673_p11 = pneg %p672_p9  ;;  %p679_p3 = por %p678_p7, %p677_p8 }
  0x48   : > { %p680_p6 = pnand %p679_p3, %p673_p11 }
  0x4a   : > { %683 = shalt.err (!%p680_p6)
}
  0x4b   : > { %564 = dma.hbm_to_vmem [thread:$0]  (!%p910_p0), %s955_s22, 128, %s223_s4, %s207_s6  }
  0x4c   : > { %p1109_p13 = scmp.ne.s32.totalorder %s1108_s11, 0 }
  0x4d   : > { %s982_s23 = sand.u32 (!%p1109_p13), 1, %s786_s13   ;;  %p1110_p8 = scmp.ne.s32.totalorder (!%p1109_p13), %s1102_s24, 0 }
  0x4e   : > { %231 = sbr.rel (%p1109_p13) target bundleno = 138 (0x8a), region = 28  ;;  %s985_s8 = sshll.u32 (!%p1109_p13), %s982_s23, 3 }
  0x4f   : > { %s234_s10 = scalar_lea.sflag (!%p1109_p13), [#allocation3], %s982_s23  ;;  %s237_s5 = scalar_lea.vmem (!%p1109_p13), [#allocation2], %s985_s8 }
  0x55   : > { %765 = dma.done.wait (%p1110_p8), %s234_s10, 128  }
  0x56   : > { %767 = vsyncadd (%p1110_p8), %s234_s10, 4294967168  ;;  %s243_s9 = scalar_lea.sflag [#allocation6], %s982_s23  ;;  %s246_s11 = scalar_lea.vmem [#allocation5], %s985_s8 }
  0x57   : > { %769 = dma.done.wait (%p1110_p8), %s243_s9, 128  }
  0x58   : > { %771 = vsyncadd (%p1110_p8), %s243_s9, 4294967168  ;;  %v284_v0 = vlaneseq  ;;  %v301_v4 = vld [vmem:[%s237_s5] sm:$0xff]  ;;  %v302_v5 = vld [vmem:[%s246_s11] sm:$0xff]  ;;  %s271_s22 = scalar_lea.vmem [#allocation7], %s985_s8  ;;  %s278_s6 = scalar_lea.vmem [#allocation8], %s985_s8 }
  0x59   : > { %s349_s4 = sshll.u32 %s271_s22, 4  ;;  %s367_s30 = sshll.u32 %s278_s6, 4  ;;  %v306_v6 = vcombine.high %v302_v5, %v302_v5  ;;  %v309_v7 = vcombine.high %v301_v4, %v301_v4  ;;  %s1012_s4 = int_to_ptr.vmem [resolvable:$true] %s349_s4  ;;  %s1016_s30 = int_to_ptr.vmem [resolvable:$true] %s367_s30 }
  0x5a   : > { %v285_v1 = vshrl.u32 %v284_v0, 7  ;;  %s548_s24 = sshll.u32 %s794_s15, 7  ;;  %s326_s21 = scalar_lea.sflag [#allocation4], %s982_s23 }
  0x5b   : > { %s1021_s28 = scalar_lea.hbm %s1097_s2, %s548_s24  ;;  %s1026_s19 = scalar_lea.hbm %s1098_s3, %s548_s24 }
  0x5c   : > { %v292_v2 = vand.u32 1, %v285_v1  ;;  %s684_s8 = scalar_lea.vmem %s1012_s4, 128  ;;  %p1113_p5 = scmp.ne.s32.totalorder %s1103_s25, 0 }
  0x5d   : > { %p685_p0 = scmp.ne.s32.totalorder %s1012_s4, %s684_s8  ;;  %s806_s10 = smov [#allocation7]  }
  0x5e   : > { %vm999_vm0 = vcmp.eq.s32.totalorder %v292_v2, 0  ;;  %s688_s5 = sshll.u32 %s806_s10, 4  ;;  %s689_s5 = int_to_ptr.vmem [resolvable:$false] %s688_s5 }
  0x5f   : > { %v311_v8 = vsel %vm999_vm0, %v302_v5, %v301_v4  ;;  %v318_v9 = vsel %vm999_vm0, %v301_v4, %v302_v5  ;;  %v312_v10 = vsel %vm999_vm0, %v306_v6, %v309_v7  ;;  %v319_v11 = vsel %vm999_vm0, %v309_v7, %v306_v6  ;;  %p686_p7 = pnand %p685_p0, %p1113_p5  ;;  %s690_s9 = scalar_lea.vmem %s689_s5, 256 }
  0x60   : > { %v315_v12 = vcombine.low %v311_v8, %v312_v10  ;;  %v322_v13 = vcombine.low %v318_v9, %v319_v11  ;;  %p691_p10 = scmp.lt.s32.totalorder %s1012_s4, %s689_s5  ;;  %p692_p12 = scmp.lt.s32.totalorder %s690_s9, %s684_s8 }
  0x61   : > { %p687_p4 = pneg %p686_p7 }
  0x62   : > { %317 = vst [vmem:[%s271_s22] sm:$0xff] %v315_v12  ;;  %324 = vst [vmem:[%s278_s6] sm:$0xff] %v322_v13  ;;  %p693_p1 = por %p692_p12, %p691_p10 }
  0x64   : > { %p694_p2 = pnand %p693_p1, %p687_p4 }
  0x66   : > { %697 = shalt.err (!%p694_p2)
}
  0x67   : > { %s698_s11 = scalar_lea.hbm %s1021_s28, 128  ;;  %s702_s24 = scalar_lea.hbm %s1097_s2, 256 }
  0x68   : > { %p699_p9 = scmp.ne.s32.totalorder %s1021_s28, %s698_s11  ;;  %p703_p6 = scmp.lt.u32.totalorder %s1021_s28, %s1097_s2 }
  0x69   : > { %p704_p13 = scmp.lt.u32.totalorder %s702_s24, %s698_s11  ;;  %p706_p0 = scmp.lt.u32.totalorder %s698_s11, %s1021_s28 }
  0x6a   : > { %p700_p11 = pnand %p699_p9, %p1113_p5 }
  0x6b   : > { %p705_p8 = por %p704_p13, %p703_p6 }
  0x6c   : > { %p701_p3 = pneg %p700_p11 }
  0x6d   : > { %p707_p7 = por %p706_p0, %p705_p8 }
  0x6f   : > { %p708_p4 = pnand %p707_p7, %p701_p3 }
  0x71   : > { %711 = shalt.err (!%p708_p4)
}
  0x72   : > { %554 = dma.vmem_to_hbm [thread:$0]  (%p1113_p5), %s1012_s4, 128, %s1021_s28, %s326_s21  }
  0x73   : > { %s331_s15 = scalar_lea.sflag [#allocation9], %s982_s23  ;;  %s712_s29 = scalar_lea.vmem %s1016_s30, 128 }
  0x74   : > { %p713_p10 = scmp.ne.s32.totalorder %s1016_s30, %s712_s29  ;;  %s807_s8 = smov [#allocation8]  }
  0x75   : > { %s716_s10 = sshll.u32 %s807_s8, 4  ;;  %s717_s10 = int_to_ptr.vmem [resolvable:$false] %s716_s10 }
  0x76   : > { %p714_p12 = pnand %p713_p10, %p1113_p5  ;;  %s718_s5 = scalar_lea.vmem %s717_s10, 256 }
  0x77   : > { %p719_p2 = scmp.lt.s32.totalorder %s1016_s30, %s717_s10  ;;  %p720_p9 = scmp.lt.s32.totalorder %s718_s5, %s712_s29 }
  0x78   : > { %p715_p1 = pneg %p714_p12 }
  0x79   : > { %p721_p11 = por %p720_p9, %p719_p2 }
  0x7b   : > { %p722_p3 = pnand %p721_p11, %p715_p1 }
  0x7d   : > { %725 = shalt.err (!%p722_p3)
}
  0x7e   : > { %s726_s23 = scalar_lea.hbm %s1026_s19, 128  ;;  %s730_s21 = scalar_lea.hbm %s1098_s3, 256 }
  0x7f   : > { %p727_p6 = scmp.ne.s32.totalorder %s1026_s19, %s726_s23  ;;  %p731_p0 = scmp.lt.u32.totalorder %s1026_s19, %s1098_s3 }
  0x80   : > { %p732_p7 = scmp.lt.u32.totalorder %s730_s21, %s726_s23  ;;  %p734_p10 = scmp.lt.u32.totalorder %s726_s23, %s1026_s19 }
  0x81   : > { %p728_p13 = pnand %p727_p6, %p1113_p5 }
  0x82   : > { %p733_p4 = por %p732_p7, %p731_p0 }
  0x83   : > { %p729_p8 = pneg %p728_p13 }
  0x84   : > { %p735_p12 = por %p734_p10, %p733_p4 }
  0x86   : > { %p736_p1 = pnand %p735_p12, %p729_p8 }
  0x88   : > { %739 = shalt.err (!%p736_p1)
}
  0x89   : > { %555 = dma.vmem_to_hbm [thread:$0]  (%p1113_p5), %s1016_s30, 128, %s1026_s19, %s331_s15  }
  0x8a PF: > { %s379_s22 = sand.u32 1, %s782_s12   ;;  %p1114_p2 = scmp.ne.s32.totalorder %s1104_s27, 0 }
  0x8b   : > { %p1115_p9 = scmp.ge.s32.totalorder %s802_s17, 2  ;;  %s380_s6 = scalar_lea.sflag [#allocation4], %s379_s22 }
  0x8d   : > { %p566_p11 = pnand %p1115_p9, %p1114_p2 }
  0x8f   : > { %773 = dma.done.wait (!%p566_p11), %s380_s6, 128  }
  0x90   : > { %775 = vsyncadd (!%p566_p11), %s380_s6, 4294967168  ;;  %s389_s24 = scalar_lea.sflag [#allocation9], %s379_s22 }
  0x91   : > { %777 = dma.done.wait (!%p566_p11), %s389_s24, 128  }
  0x92   : > { %779 = vsyncadd (!%p566_p11), %s389_s24, 4294967168  ;;  %s26_s17 = sadd.s32 1, %s802_s17   ;;  %s1116_s12 = smov %s786_s13 }
  0x93   : > { %p23_p3 = scmp.ge.s32.totalorder %s26_s17, 4   ;;  %s1117_s13 = smov %s790_s14 }
  0x94   : > { %s1118_s14 = smov %s884_s26  ;;  %s1119_s15 = smov %s798_s16 }
  0x95   : > { %s1120_s16 = smov %s1122_s20  ;;  %25 = sbr.rel (!%p23_p3) target bundleno = 10 (0xa), region = 103 }
  0x9c   :  { %394 = vsyncpa [#allocation3], 1 }
  0x9d   :  { %396 = vsyncpa [#allocation3 + $0x1], 1 }
  0x9e   :  { %397 = vsyncpa [#allocation6], 1 }
  0x9f   :  { %399 = vsyncpa [#allocation6 + $0x1], 1 }
  0xa0   :  { %400 = vsyncpa [#allocation4], 1 }
  0xa1   :  { %402 = vsyncpa [#allocation4 + $0x1], 1 }
  0xa2   :  { %403 = vsyncpa [#allocation9], 1 }
  0xa3   :  { %405 = vsyncpa [#allocation9 + $0x1], 1 }

</bundles_post_ra>
